<compile_context>
chip_gen: v6e
topology: v6e:2x2x1
jax: 0.10.0
libtpu: 0.0.40
codegen_flags: <defaults>
</compile_context>

<pallas_src>
import functools

import jax
import jax.numpy as jnp
from jax import lax
from jax.experimental import pallas as pl
from jax.experimental.pallas import tpu as pltpu


# ---------------------------------------------------------------------------
# Tile sizing helpers
# ---------------------------------------------------------------------------

def _tpu_vmem_capacity_bytes():
    """Physical VMEM per TensorCore, with a conservative fallback (v7x)."""
    try:
        info = pltpu.get_tpu_info()
        cap = int(getattr(info, "vmem_capacity_bytes", 0))
        if cap > 0:
            return cap
    except Exception:
        pass
    return 64 * 1024 * 1024  # v7x has the smallest VMEM; safe everywhere


def _pick_tile_n(n, c, vmem_budget_bytes):
    """Largest multiple-of-8 row tile whose double-buffered, lane-padded
    logits block stays inside the VMEM budget (capped at 1024 rows)."""
    c_pad = max(-(-c // 128) * 128, 128)        # last dim pads to 128 lanes in VMEM
    bytes_per_row = 2 * c_pad * 4               # 2 pipeline buffers, f32 working copy
    tile = vmem_budget_bytes // bytes_per_row
    tile = max(8, min(int(tile), 1024))
    tile = (tile // 8) * 8
    n_pad = -(-n // 8) * 8
    return max(8, min(tile, n_pad))


# ---------------------------------------------------------------------------
# Kernel
# ---------------------------------------------------------------------------

def _focal_loss_kernel(*refs, gamma, reduction, use_alpha, n_total, tile_n,
                       inv_n):
    if use_alpha:
        logits_ref, target_ref, alpha_ref = refs[0], refs[1], refs[2]
        rest = refs[3:]
    else:
        logits_ref, target_ref = refs[0], refs[1]
        alpha_ref = None
        rest = refs[2:]

    if reduction == "none":
        (out_ref,) = rest
        acc_ref = None
    else:
        out_ref, acc_ref = rest

    pid = pl.program_id(0)

    x = logits_ref[...].astype(jnp.float32)                 # (TILE_N, C)
    t = target_ref[...]                                      # (TILE_N, 1) int32

    # Validity mask for the ragged last tile (global row index < N).
    row = lax.broadcasted_iota(jnp.int32, (tile_n, 1), 0) + pid * tile_n
    valid = row < n_total                                     # (TILE_N, 1)

    # Numerically stable log-sum-exp over the class (lane) axis.
    m = jnp.max(x, axis=-1, keepdims=True)                    # (TILE_N, 1)
    lse = m + jnp.log(jnp.sum(jnp.exp(x - m), axis=-1, keepdims=True))

    # Single iota==target mask, reused for both the logit and alpha selects.
    col = lax.broadcasted_iota(jnp.int32, x.shape, 1)         # (TILE_N, C)
    sel = col == t                                            # (TILE_N, C) bool
    tgt_logit = jnp.sum(jnp.where(sel, x, 0.0), axis=-1, keepdims=True)

    # Cross entropy; clamp tiny negative rounding so (1 - pt) >= 0.
    ce = jnp.maximum(lse - tgt_logit, 0.0)                    # (TILE_N, 1)
    pt = jnp.exp(-ce)
    base = 1.0 - pt
    if isinstance(gamma, int):
        w = lax.integer_pow(base, gamma)                      # VPU multiplies
    else:
        # Float gamma: exp(gamma * log1p(-pt)) with pt clamped <= 1 (no NaN).
        w = jnp.exp(gamma * jnp.log1p(-jnp.minimum(pt, 1.0)))
    focal = w * ce                                            # (TILE_N, 1)

    if use_alpha:
        a = alpha_ref[...].astype(jnp.float32)                # (1, C)
        at = jnp.sum(jnp.where(sel, a, 0.0), axis=-1, keepdims=True)
        focal = focal * at

    # Zero out padded rows so they never contribute to stores / reductions.
    focal = jnp.where(valid, focal, 0.0)

    if reduction == "none":
        out_ref[...] = focal
    else:
        @pl.when(pid == 0)
        def _init():
            acc_ref[...] = jnp.zeros_like(acc_ref)

        acc_ref[...] += focal

        @pl.when(pid == pl.num_programs(0) - 1)
        def _finalize():
            total = jnp.sum(acc_ref[...], axis=0, keepdims=True)  # (1, 1)
            if reduction == "mean":
                total = total * inv_n
            out_ref[...] = total


# ---------------------------------------------------------------------------
# Wrapper
# ---------------------------------------------------------------------------

def focal_loss(logits, target, *, gamma=6, alpha=None, reduction="mean",
               tile_n=None):
    """Pallas TPU implementation of FocalLoss.forward.

    logits: (N, C) float32 or bfloat16
    target: (N,)   integer class indices in [0, C)
    alpha:  None, a scalar (torch convention -> [alpha, 1-alpha], binary case),
            or a 1-D per-class weight vector of length C.
    """
    if reduction not in ("mean", "sum", "none"):
        raise ValueError(f"unknown reduction: {reduction!r}")

    n, c = logits.shape
    target2d = target.astype(jnp.int32).reshape(n, 1)

    use_alpha = alpha is not None
    inputs = [logits, target2d]

    if tile_n is None:
        tile_n = _pick_tile_n(n, c, _tpu_vmem_capacity_bytes() // 8)
    tile_n = max(8, min(int(tile_n), -(-n // 8) * 8))
    tile_n = (tile_n // 8) * 8
    num_tiles = pl.cdiv(n, tile_n)

    in_specs = [
        pl.BlockSpec((tile_n, c), lambda i: (i, 0)),   # logits tiles (pipelined)
        pl.BlockSpec((tile_n, 1), lambda i: (i, 0)),   # target tiles
    ]
    if use_alpha:
        if isinstance(alpha, (float, int)):
            alpha_arr = jnp.array([alpha, 1.0 - alpha], dtype=jnp.float32)
        else:
            alpha_arr = jnp.asarray(alpha, dtype=jnp.float32)
        assert alpha_arr.shape[0] == c, "alpha must have one weight per class"
        inputs.append(alpha_arr.reshape(1, c))
        # Constant index map -> alpha stays resident in VMEM across the grid.
        in_specs.append(pl.BlockSpec((1, c), lambda i: (0, 0)))

    if reduction == "none":
        out_shape = jax.ShapeDtypeStruct((n, 1), jnp.float32)
        out_specs = pl.BlockSpec((tile_n, 1), lambda i: (i, 0))
        scratch_shapes = []
        semantics = ("parallel",)            # independent tiles -> megacore
    else:
        out_shape = jax.ShapeDtypeStruct((1, 1), jnp.float32)
        out_specs = pl.BlockSpec((1, 1), lambda i: (0, 0))   # resident scalar tile
        scratch_shapes = [pltpu.VMEM((tile_n, 1), jnp.float32)]  # accumulator
        semantics = ("arbitrary",)           # sequential reduction over tiles

    kernel = functools.partial(
        _focal_loss_kernel,
        gamma=gamma,
        reduction=reduction,
        use_alpha=use_alpha,
        n_total=n,
        tile_n=tile_n,
        inv_n=1.0 / float(n),
    )

    vmem_limit = min(_tpu_vmem_capacity_bytes() // 2, 96 * 1024 * 1024)

    result = pl.pallas_call(
        kernel,
        out_shape=out_shape,
        grid_spec=pltpu.PrefetchScalarGridSpec(
            num_scalar_prefetch=0,
            grid=(num_tiles,),
            in_specs=in_specs,
            out_specs=out_specs,
            scratch_shapes=scratch_shapes,
        ),
        compiler_params=pltpu.CompilerParams(
            dimension_semantics=semantics,
            vmem_limit_bytes=vmem_limit,
        ),
    )(*inputs)

    if reduction == "none":
        return result[:, 0]
    return result[0, 0]


# ---------------------------------------------------------------------------
# Pure-JAX reference for verification
# ---------------------------------------------------------------------------

def _focal_loss_ref(logits, target, *, gamma=6, alpha=None, reduction="mean"):
    logits = logits.astype(jnp.float32)
    lse = jax.nn.logsumexp(logits, axis=-1)
    tgt = jnp.take_along_axis(logits, target[:, None].astype(jnp.int32),
                              axis=-1)[:, 0]
    ce = lse - tgt
    pt = jnp.exp(-ce)
    focal = (1.0 - pt) ** gamma * ce
    if alpha is not None:
        focal = focal * jnp.asarray(alpha, jnp.float32)[target]
    if reduction == "mean":
        return jnp.mean(focal)
    if reduction == "sum":
        return jnp.sum(focal)
    return focal


if __name__ == "__main__":
    key = jax.random.PRNGKey(0)
    k_logits, k_target = jax.random.split(key)

    # GNN node-classification sized toy problem: 300 nodes, 32 classes.
    # N=300 with tile_n=128 exercises multiple grid steps plus a ragged tile.
    N, C = 300, 32
    logits = jax.random.normal(k_logits, (N, C), dtype=jnp.float32)
    target = jax.random.randint(k_target, (N,), 0, C, dtype=jnp.int32)

    # 1) Module defaults: gamma=6, alpha=None, reduction='mean'.
    out_mean = focal_loss(logits, target, gamma=6, alpha=None,
                          reduction="mean", tile_n=128)
    out_mean = jax.block_until_ready(out_mean)
    ref_mean = _focal_loss_ref(logits, target, gamma=6, reduction="mean")
    assert jnp.allclose(out_mean, ref_mean, rtol=1e-5, atol=1e-6), (out_mean, ref_mean)

    # 2) 'sum' reduction.
    out_sum = focal_loss(logits, target, gamma=6, reduction="sum", tile_n=128)
    out_sum = jax.block_until_ready(out_sum)
    ref_sum = _focal_loss_ref(logits, target, gamma=6, reduction="sum")
    assert jnp.allclose(out_sum, ref_sum, rtol=1e-5, atol=1e-5), (out_sum, ref_sum)

    # 3) Per-class alpha + 'none'.
    alpha_vec = jnp.linspace(0.2, 1.0, C, dtype=jnp.float32)
    out_none = focal_loss(logits, target, gamma=6, alpha=alpha_vec,
                          reduction="none", tile_n=128)
    out_none = jax.block_until_ready(out_none)
    ref_none = _focal_loss_ref(logits, target, gamma=6, alpha=alpha_vec,
                               reduction="none")
    assert jnp.allclose(out_none, ref_none, rtol=1e-5, atol=1e-6)

    # 4) bf16 logits, auto tile sizing (bandwidth-bound path).
    logits_bf16 = logits.astype(jnp.bfloat16)
    out_bf16 = focal_loss(logits_bf16, target, gamma=6, reduction="mean")
    out_bf16 = jax.block_until_ready(out_bf16)
    ref_bf16 = _focal_loss_ref(logits_bf16, target, gamma=6, reduction="mean")
    assert jnp.allclose(out_bf16, ref_bf16, rtol=1e-4, atol=1e-5)

    print("KERNEL_OK")
</pallas_src>

<mosaic_0001>
module attributes {stable_mosaic.version = 11 : i64} {
  func.func @_focal_loss_kernel(%arg0: i32, %arg1: memref<128x32xf32, #tpu.memory_space<vmem>>, %arg2: memref<128x1xi32, #tpu.memory_space<vmem>>, %arg3: memref<1x1xf32, #tpu.memory_space<vmem>>, %arg4: memref<128x1xf32, #tpu.memory_space<vmem>>) attributes {dimension_semantics = [#tpu.dimension_semantics<arbitrary>], iteration_bounds = array<i64: 3>, scalar_prefetch = 0 : i64, scratch_operands = 1 : i64, tpu.core_type = #tpu.core_type<tc>, window_params = [{transform_indices = @transform_0, window_bounds = array<i64: 128, 32>}, {transform_indices = @transform_1, window_bounds = array<i64: 128, 1>}, {pipeline_mode = #tpu.pipeline_mode<synchronous>, transform_indices = @transform_2, window_bounds = array<i64: 1, 1>}]} {
    %c0 = arith.constant 0 : index
    %c0_0 = arith.constant 0 : index
    %0 = vector.load %arg1[%c0, %c0_0] : memref<128x32xf32, #tpu.memory_space<vmem>>, vector<128x32xf32>
    %c0_1 = arith.constant 0 : index
    %c0_2 = arith.constant 0 : index
    %1 = vector.load %arg2[%c0_1, %c0_2] : memref<128x1xi32, #tpu.memory_space<vmem>>, vector<128x1xi32>
    %2 = tpu.iota {dimensions = array<i32: 0>} : vector<128x1xi32>
    %c128_i32 = arith.constant 128 : i32
    %3 = arith.muli %arg0, %c128_i32 : i32
    %4 = vector.broadcast %3 : i32 to vector<128x1xi32>
    %5 = arith.addi %2, %4 : vector<128x1xi32>
    %c300_i32 = arith.constant 300 : i32
    %6 = vector.broadcast %c300_i32 : i32 to vector<128x1xi32>
    %7 = arith.cmpi slt, %5, %6 : vector<128x1xi32>
    %cst = arith.constant dense<0xFF800000> : vector<128xf32>
    %8 = vector.multi_reduction <maximumf>, %0, %cst [1] : vector<128x32xf32> to vector<128xf32>
    %9 = vector.shape_cast %8 : vector<128xf32> to vector<128x1xf32>
    %10 = vector.broadcast %9 : vector<128x1xf32> to vector<128x32xf32>
    %11 = arith.subf %0, %10 : vector<128x32xf32>
    %12 = math.exp %11 : vector<128x32xf32>
    %cst_3 = arith.constant dense<0.000000e+00> : vector<128xf32>
    %13 = vector.multi_reduction <add>, %12, %cst_3 [1] : vector<128x32xf32> to vector<128xf32>
    %14 = vector.shape_cast %13 : vector<128xf32> to vector<128x1xf32>
    %15 = math.log %14 : vector<128x1xf32>
    %16 = arith.addf %9, %15 : vector<128x1xf32>
    %17 = tpu.iota {dimensions = array<i32: 1>} : vector<128x32xi32>
    %18 = vector.broadcast %1 : vector<128x1xi32> to vector<128x32xi32>
    %19 = arith.cmpi eq, %17, %18 : vector<128x32xi32>
    %cst_4 = arith.constant 0.000000e+00 : f32
    %20 = vector.broadcast %cst_4 : f32 to vector<128x32xf32>
    %21 = arith.select %19, %0, %20 : vector<128x32xi1>, vector<128x32xf32>
    %cst_5 = arith.constant dense<0.000000e+00> : vector<128xf32>
    %22 = vector.multi_reduction <add>, %21, %cst_5 [1] : vector<128x32xf32> to vector<128xf32>
    %23 = vector.shape_cast %22 : vector<128xf32> to vector<128x1xf32>
    %24 = arith.subf %16, %23 : vector<128x1xf32>
    %cst_6 = arith.constant 0.000000e+00 : f32
    %25 = vector.broadcast %cst_6 : f32 to vector<128x1xf32>
    %26 = arith.maximumf %24, %25 : vector<128x1xf32>
    %cst_7 = arith.constant 0.000000e+00 : f32
    %27 = vector.broadcast %cst_7 : f32 to vector<128x1xf32>
    %28 = arith.subf %27, %26 : vector<128x1xf32>
    %29 = math.exp %28 : vector<128x1xf32>
    %cst_8 = arith.constant 1.000000e+00 : f32
    %30 = vector.broadcast %cst_8 : f32 to vector<128x1xf32>
    %31 = arith.subf %30, %29 : vector<128x1xf32>
    %32 = arith.mulf %31, %31 : vector<128x1xf32>
    %33 = arith.mulf %32, %32 : vector<128x1xf32>
    %34 = arith.mulf %32, %33 : vector<128x1xf32>
    %35 = arith.mulf %34, %26 : vector<128x1xf32>
    %cst_9 = arith.constant 0.000000e+00 : f32
    %36 = vector.broadcast %cst_9 : f32 to vector<128x1xf32>
    %37 = arith.select %7, %35, %36 : vector<128x1xi1>, vector<128x1xf32>
    %c0_i32 = arith.constant 0 : i32
    %38 = arith.cmpi eq, %arg0, %c0_i32 : i32
    %39 = arith.extui %38 : i1 to i32
    %c0_i32_10 = arith.constant 0 : i32
    %40 = arith.cmpi ne, %39, %c0_i32_10 : i32
    scf.if %40 {
      %cst_16 = arith.constant 0.000000e+00 : f32
      %47 = vector.broadcast %cst_16 : f32 to vector<128x1xf32>
      %c0_17 = arith.constant 0 : index
      %c0_18 = arith.constant 0 : index
      %48 = vector.load %arg4[%c0_17, %c0_18] : memref<128x1xf32, #tpu.memory_space<vmem>>, vector<128x1xf32>
      tpu.vector_store %arg4[%c0_17, %c0_18], %47 {strides = array<i32>} : memref<128x1xf32, #tpu.memory_space<vmem>>, vector<128x1xf32>,
    } else {
    }
    %c0_11 = arith.constant 0 : index
    %c0_12 = arith.constant 0 : index
    %41 = vector.load %arg4[%c0_11, %c0_12] : memref<128x1xf32, #tpu.memory_space<vmem>>, vector<128x1xf32>
    %42 = arith.addf %41, %37 : vector<128x1xf32>
    %c0_13 = arith.constant 0 : index
    %c0_14 = arith.constant 0 : index
    %43 = vector.load %arg4[%c0_13, %c0_14] : memref<128x1xf32, #tpu.memory_space<vmem>>, vector<128x1xf32>
    tpu.vector_store %arg4[%c0_13, %c0_14], %42 {strides = array<i32>} : memref<128x1xf32, #tpu.memory_space<vmem>>, vector<128x1xf32>,
    %c2_i32 = arith.constant 2 : i32
    %44 = arith.cmpi eq, %arg0, %c2_i32 : i32
    %45 = arith.extui %44 : i1 to i32
    %c0_i32_15 = arith.constant 0 : i32
    %46 = arith.cmpi ne, %45, %c0_i32_15 : i32
    scf.if %46 {
      %c0_16 = arith.constant 0 : index
      %c0_17 = arith.constant 0 : index
      %47 = vector.load %arg4[%c0_16, %c0_17] : memref<128x1xf32, #tpu.memory_space<vmem>>, vector<128x1xf32>
      %cst_18 = arith.constant dense<0.000000e+00> : vector<1xf32>
      %48 = vector.multi_reduction <add>, %47, %cst_18 [0] : vector<128x1xf32> to vector<1xf32>
      %49 = vector.shape_cast %48 : vector<1xf32> to vector<1x1xf32>
      %cst_19 = arith.constant 0.00333333341 : f32
      %50 = vector.broadcast %cst_19 : f32 to vector<1x1xf32>
      %51 = arith.mulf %49, %50 : vector<1x1xf32>
      %c0_20 = arith.constant 0 : index
      %c0_21 = arith.constant 0 : index
      %52 = vector.load %arg3[%c0_20, %c0_21] : memref<1x1xf32, #tpu.memory_space<vmem>>, vector<1x1xf32>
      tpu.vector_store %arg3[%c0_20, %c0_21], %51 {strides = array<i32>} : memref<1x1xf32, #tpu.memory_space<vmem>>, vector<1x1xf32>,
    } else {
    }
    return
  }
  func.func @transform_0(%arg0: i32) -> (i32, i32) {
    %c0_i32 = arith.constant 0 : i32
    %c0_i32_0 = arith.constant 0 : i32
    return %arg0, %c0_i32 : i32, i32
  }
  func.func @transform_1(%arg0: i32) -> (i32, i32) {
    %c0_i32 = arith.constant 0 : i32
    %c0_i32_0 = arith.constant 0 : i32
    return %arg0, %c0_i32 : i32, i32
  }
  func.func @transform_2(%arg0: i32) -> (i32, i32) {
    %c0_i32 = arith.constant 0 : i32
    %c0_i32_0 = arith.constant 0 : i32
    %c0_i32_1 = arith.constant 0 : i32
    return %c0_i32, %c0_i32_0 : i32, i32
  }
}

</mosaic_0001>

<bundles_post_ra>
// kernel: tpu_custom_call.1
= control target key start
LH: loop header
LB: loop body
LE: loop exit
PB: predicated region body
PF: predicated region fallthrough
CT: control target
= control target key end

     0   :  { %7 = vsyncpa [#allocation4], 0  ;;  %s1148_s9 = smov 0   ;;  %s1695_s0 = inlined_call_operand.vmem [shape: f32[300,32], index: 0, kind: input, shape index: {}]   ;;  %s1696_s1 = inlined_call_operand.vmem [shape: s32[300,1], index: 1, kind: input, shape index: {}]   ;;  %s1697_s2 = inlined_call_operand.hbm [shape: f32[1,1], index: 2, kind: output, shape index: {}]  }
   0x1 LB: > { %s1154_s10 = sadd.s32 4294967295, %s1128_s9   ;;  %p967_p0 = scmp.ge.s32.totalorder %s1128_s9, 1  ;;  %s1128_s9 = sphi %s1148_s9, %s13_s9  }
   0x2   : > { %p136_p1 = scmp.lt.s32.totalorder %s1128_s9, 4 }
   0x4   : > { %p137_p2 = pnand %p967_p0, %p136_p1 }
   0x5   : > { %s968_s11 = sshll.u32 (!%p137_p2), %s1154_s10, 4  ;;  %s972_s19 = sshll.u32 (!%p137_p2), %s1154_s10, 7 }
   0x6   : > { %140 = sbr.rel (%p137_p2) target bundleno = 521 (0x209), region = 28  ;;  %p171_p3 = scmp.lt.s32.totalorder (!%p137_p2), %s968_s11, 37 }
   0x7   : > { %p973_p4 = scmp.ne.s32.totalorder (!%p137_p2), %s1154_s10, 0 }
   0xb   : > { %v1130_v0 = vmov 0   ;;  %s1699_s11 = smov (!%p171_p3, %s968_s11), 37  ;;  %vm277_vm0 = vcmask 261120   ;;  %v226_v63 = vlaneseq }
   0xc   : > { %997 = vset.pattern.permute.xlu1 %v1130_v0  ;;  %996 = vset.pattern.permute.xlu0 %v1130_v0  ;;  %s969_s12 = sshll.u32 %s1699_s11, 3 }
   0xd   : > { %s1167_s15 = scalar_lea.vmem %s1695_s0, %s969_s12  ;;  %s1254_s18 = scalar_lea.vmem %s1696_s1, %s969_s12 }
   0xe   : > { %v1170_v1 = vld [vmem:[%s1167_s15 + $0x10] sm:$0xff]  ;;  %v1173_v2 = vld [vmem:[%s1167_s15] sm:$0xff]  ;;  %v1176_v3 = vld [vmem:[%s1167_s15 + $0x18] sm:$0xff] }
   0xf   : > { %v284_v4 = vsel %vm277_vm0, %v1170_v1, -inf  ;;  %v278_v5 = vsel %vm277_vm0, %v1173_v2, -inf  ;;  %v1183_v6 = vld [vmem:[%s1167_s15 + $0x8] sm:$0xff]  ;;  %v287_v7 = vsel %vm277_vm0, %v1176_v3, -inf  ;;  %v1193_v10 = vld [vmem:[%s1167_s15 + $0x20] sm:$0xff]  ;;  %v1200_v13 = vld [vmem:[%s1167_s15 + $0x38] sm:$0xff] }
  0x10   : > { %285 = vmax.xlane.f32.xlu1 %v284_v4  ;;  %279 = vmax.xlane.f32.xlu0 %v278_v5  ;;  %v281_v8 = vsel %vm277_vm0, %v1183_v6, -inf  ;;  %v1190_v9 = vld [vmem:[%s1167_s15 + $0x28] sm:$0xff]  ;;  %v290_v12 = vsel %vm277_vm0, %v1193_v10, -inf  ;;  %v1203_v14 = vld [vmem:[%s1167_s15 + $0x30] sm:$0xff]  ;;  %v299_v15 = vsel %vm277_vm0, %v1200_v13, -inf  ;;  %v1213_v18 = vld [vmem:[%s1167_s15 + $0x40] sm:$0xff] }
  0x11   : > { %v293_v11 = vsel %vm277_vm0, %v1190_v9, -inf  ;;  %v296_v16 = vsel %vm277_vm0, %v1203_v14, -inf  ;;  %v1210_v17 = vld [vmem:[%s1167_s15 + $0x48] sm:$0xff]  ;;  %v302_v20 = vsel %vm277_vm0, %v1213_v18, -inf  ;;  %v1220_v21 = vld [vmem:[%s1167_s15 + $0x58] sm:$0xff]  ;;  %v1223_v22 = vld [vmem:[%s1167_s15 + $0x50] sm:$0xff] }
  0x12   : > { %v305_v19 = vsel %vm277_vm0, %v1210_v17, -inf  ;;  %v311_v23 = vsel %vm277_vm0, %v1220_v21, -inf  ;;  %v308_v24 = vsel %vm277_vm0, %v1223_v22, -inf  ;;  %v1230_v25 = vld [vmem:[%s1167_s15 + $0x68] sm:$0xff]  ;;  %v1233_v26 = vld [vmem:[%s1167_s15 + $0x60] sm:$0xff]  ;;  %v1240_v29 = vld [vmem:[%s1167_s15 + $0x78] sm:$0xff] }
  0x13   : > { %v317_v27 = vsel %vm277_vm0, %v1230_v25, -inf  ;;  %v314_v28 = vsel %vm277_vm0, %v1233_v26, -inf  ;;  %v1243_v30 = vld [vmem:[%s1167_s15 + $0x70] sm:$0xff]  ;;  %v323_v31 = vsel %vm277_vm0, %v1240_v29, -inf  ;;  %v211_v33 = vld [vmem:[%s1254_s18 + $0x8] sm:$0xff]  ;;  %v210_v35 = vld [vmem:[%s1254_s18] sm:$0xff] }
  0x14   : > { %288 = vmax.xlane.f32.xlu1 %v287_v7  ;;  %282 = vmax.xlane.f32.xlu0 %v281_v8  ;;  %v320_v32 = vsel %vm277_vm0, %v1243_v30, -inf  ;;  %v212_v34 = vld [vmem:[%s1254_s18 + $0x10] sm:$0xff]  ;;  %v213_v36 = vld [vmem:[%s1254_s18 + $0x18] sm:$0xff]  ;;  %v219_v37 = vld [vmem:[%s1254_s18 + $0x48] sm:$0xff]  ;;  %v1305_v5 = vand.u32 127, %v226_v63 }
  0x15   : > { %v214_v38 = vld [vmem:[%s1254_s18 + $0x20] sm:$0xff]  ;;  %v221_v39 = vld [vmem:[%s1254_s18 + $0x58] sm:$0xff]  ;;  %v215_v40 = vld [vmem:[%s1254_s18 + $0x28] sm:$0xff] }
  0x16   : > { %v223_v41 = vld [vmem:[%s1254_s18 + $0x68] sm:$0xff]  ;;  %v216_v42 = vld [vmem:[%s1254_s18 + $0x30] sm:$0xff]  ;;  %v225_v43 = vld [vmem:[%s1254_s18 + $0x78] sm:$0xff] }
  0x17   : > { %v217_v44 = vld [vmem:[%s1254_s18 + $0x38] sm:$0xff]  ;;  %v218_v45 = vld [vmem:[%s1254_s18 + $0x40] sm:$0xff]  ;;  %v220_v46 = vld [vmem:[%s1254_s18 + $0x50] sm:$0xff] }
  0x18   : > { %294 = vmax.xlane.f32.xlu1 %v293_v11  ;;  %291 = vmax.xlane.f32.xlu0 %v290_v12  ;;  %v222_v47 = vld [vmem:[%s1254_s18 + $0x60] sm:$0xff]  ;;  %v224_v48 = vld [vmem:[%s1254_s18 + $0x70] sm:$0xff] }
  0x1c   : > { %300 = vmax.xlane.f32.xlu1 %v299_v15  ;;  %297 = vmax.xlane.f32.xlu0 %v296_v16 }
  0x20   : > { %306 = vmax.xlane.f32.xlu1 %v305_v19  ;;  %303 = vmax.xlane.f32.xlu0 %v302_v20 }
  0x24   : > { %312 = vmax.xlane.f32.xlu1 %v311_v23  ;;  %309 = vmax.xlane.f32.xlu0 %v308_v24 }
  0x28   : > { %318 = vmax.xlane.f32.xlu1 %v317_v27  ;;  %315 = vmax.xlane.f32.xlu0 %v314_v28 }
  0x2c   : > { %324 = vmax.xlane.f32.xlu1 %v323_v31  ;;  %321 = vmax.xlane.f32.xlu0 %v320_v32 }
  0x3d   : > { %476 = vperm.xlu1 %997, %v211_v33  }
  0x41   : > { %479 = vperm.xlu1 %997, %v212_v34  }
  0x42   : > { %473 = vperm.xlu0 %996, %v210_v35  }
  0x45   : > { %482 = vperm.xlu1 %997, %v213_v36  }
  0x46   : > { %500 = vperm.xlu0 %996, %v219_v37  }
  0x49   : > { %485 = vperm.xlu1 %997, %v214_v38  }
  0x4a   : > { %506 = vperm.xlu0 %996, %v221_v39  }
  0x4d   : > { %488 = vperm.xlu1 %997, %v215_v40  }
  0x4e   : > { %512 = vperm.xlu0 %996, %v223_v41  }
  0x51   : > { %491 = vperm.xlu1 %997, %v216_v42  }
  0x52   : > { %518 = vperm.xlu0 %996, %v225_v43  }
  0x55   : > { %494 = vperm.xlu1 %997, %v217_v44  }
  0x59   : > { %497 = vperm.xlu1 %997, %v218_v45  }
  0x5d   : > { %503 = vperm.xlu1 %997, %v220_v46  }
  0x61   : > { %509 = vperm.xlu1 %997, %v222_v47  }
  0x65   : > { %515 = vperm.xlu1 %997, %v224_v48  }
  0x99   : > { %v1272_v49 = vpop.xlane.xlu1 %285  ;;  %v1274_v50 = vpop.xlane.xlu0 %279 }
  0x9a   : > { %v328_v7 = vsub.f32 %v1170_v1, %v1272_v49  ;;  %v326_v11 = vsub.f32 %v1173_v2, %v1274_v50 }
  0x9c   : > { %v346_v16 = vmul.f32 1.442695, %v328_v7  ;;  %v342_v23 = vmul.f32 1.442695, %v326_v11 }
  0x9d   : > { %v1276_v51 = vpop.xlane.xlu1 %288  ;;  %v1278_v52 = vpop.xlane.xlu0 %282 }
  0x9e   : > { %v327_v0 = vsub.f32 %v1183_v6, %v1278_v52  ;;  %v329_v19 = vsub.f32 %v1176_v3, %v1276_v51 }
  0xa0   : > { %v344_v12 = vmul.f32 1.442695, %v327_v0  ;;  %v348_v32 = vmul.f32 1.442695, %v329_v19 }
  0xa1   : > { %v1280_v53 = vpop.xlane.xlu1 %294  ;;  %v1282_v54 = vpop.xlane.xlu0 %291 }
  0xa2   : > { %998 = vpow2.f32 %v344_v12  ;;  %v330_v24 = vsub.f32 %v1193_v10, %v1282_v54  ;;  %v331_v33 = vsub.f32 %v1190_v9, %v1280_v53 }
  0xa3   : > { %1000 = vpow2.f32 %v346_v16 }
  0xa4   : > { %1002 = vpow2.f32 %v342_v23  ;;  %v350_v34 = vmul.f32 1.442695, %v330_v24  ;;  %v352_v40 = vmul.f32 1.442695, %v331_v33 }
  0xa5   : > { %v1284_v55 = vpop.xlane.xlu1 %300  ;;  %v1286_v56 = vpop.xlane.xlu0 %297  ;;  %1004 = vpow2.f32 %v348_v32 }
  0xa6   : > { %v332_v35 = vsub.f32 %v1203_v14, %v1286_v56  ;;  %v333_v39 = vsub.f32 %v1200_v13, %v1284_v55  ;;  %1006 = vpow2.f32 %v350_v34 }
  0xa7   : > { %1008 = vpow2.f32 %v352_v40 }
  0xa8   : > { %v354_v42 = vmul.f32 1.442695, %v332_v35 }
  0xa9   : > { %v1288_v57 = vpop.xlane.xlu1 %306  ;;  %v1290_v58 = vpop.xlane.xlu0 %303 }
  0xaa   : > { %v335_v46 = vsub.f32 %v1210_v17, %v1288_v57  ;;  %1010 = vpow2.f32 %v354_v42 }
  0xac   : > { %v360_v12 = vmul.f32 1.442695, %v335_v46 }
  0xad   : > { %v1292_v59 = vpop.xlane.xlu1 %312  ;;  %v1294_v60 = vpop.xlane.xlu0 %309 }
  0xaf   : > { %v999_v7 = vpop.eup %998 }
  0xb0   : > { %v377_v24 = vsel %vm277_vm0, %v999_v7, 0.0 }
  0xb1   : > { %v1296_v61 = vpop.xlane.xlu1 %318  ;;  %v1298_v62 = vpop.xlane.xlu0 %315 }
  0xb5   : > { %v1302_v4 = vpop.xlane.xlu1 %324  ;;  %v1309_v8 = vpop.xlane.xlu0 %321 }
  0xb9   : > { %v477_v15 = vpop.permute.xlu1 %476 }
  0xba   : > { %vm521_vm1 = vcmp.eq.s32.totalorder %v1305_v5, %v477_v15  ;;  %v337_v15 = vsub.f32 %v1220_v21, %v1292_v59 }
  0xbb   : > { %v537_v20 = vsel %vm521_vm1, %v1183_v6, 0.0 }
  0xbc   : > { %v555_v27 = vsel %vm277_vm0, %v537_v20, 0.0  ;;  %v338_v20 = vsub.f32 %v1233_v26, %v1298_v62 }
  0xbd   : > { %v480_v28 = vpop.permute.xlu1 %479  ;;  %556 = vadd.xlane.f32.xlu1 %v555_v27  ;;  %v474_v31 = vpop.permute.xlu0 %473 }
  0xbe   : > { %vm522_vm2 = vcmp.eq.s32.totalorder %v1305_v5, %v480_v28  ;;  %vm520_vm3 = vcmp.eq.s32.totalorder %v1305_v5, %v474_v31  ;;  %v364_v28 = vmul.f32 1.442695, %v337_v15  ;;  %v339_v31 = vsub.f32 %v1230_v25, %v1296_v61 }
  0xbf   : > { %v536_v6 = vsel %vm520_vm3, %v1173_v2, 0.0  ;;  %v538_v38 = vsel %vm522_vm2, %v1170_v1, 0.0  ;;  %v334_v2 = vsub.f32 %v1213_v18, %v1290_v58  ;;  %v356_v1 = vmul.f32 1.442695, %v333_v39 }
  0xc0   : > { %v552_v36 = vsel %vm277_vm0, %v536_v6, 0.0  ;;  %v558_v44 = vsel %vm277_vm0, %v538_v38, 0.0  ;;  %v366_v33 = vmul.f32 1.442695, %v338_v20  ;;  %v340_v6 = vsub.f32 %v1243_v30, %v1309_v8 }
  0xc1   : > { %v483_v37 = vpop.permute.xlu1 %482  ;;  %553 = vadd.xlane.f32.xlu0 %v552_v36  ;;  %v358_v47 = vmul.f32 1.442695, %v334_v2  ;;  %1012 = vpow2.f32 %v356_v1  ;;  %v368_v36 = vmul.f32 1.442695, %v339_v31  ;;  %v341_v39 = vsub.f32 %v1240_v29, %v1302_v4 }
  0xc2   : > { %vm523_vm4 = vcmp.eq.s32.totalorder %v1305_v5, %v483_v37  ;;  %v370_v40 = vmul.f32 1.442695, %v340_v6 }
  0xc3   : > { %v539_v41 = vsel %vm523_vm4, %v1176_v3, 0.0  ;;  %v336_v3 = vsub.f32 %v1223_v22, %v1294_v60  ;;  %1014 = vpow2.f32 %v358_v47 }
  0xc4   : > { %v561_v43 = vsel %vm277_vm0, %v539_v41, 0.0  ;;  %1016 = vpow2.f32 %v360_v12 }
  0xc5   : > { %v486_v45 = vpop.permute.xlu1 %485  ;;  %562 = vadd.xlane.f32.xlu1 %v561_v43  ;;  %559 = vadd.xlane.f32.xlu0 %v558_v44  ;;  %v362_v19 = vmul.f32 1.442695, %v336_v3 }
  0xc6   : > { %vm524_vm5 = vcmp.eq.s32.totalorder %v1305_v5, %v486_v45  ;;  %v372_v45 = vmul.f32 1.442695, %v341_v39 }
  0xc7   : > { %v540_v48 = vsel %vm524_vm5, %v1193_v10, 0.0  ;;  %v1001_v10 = vpop.eup %1000  ;;  %1018 = vpow2.f32 %v362_v19 }
  0xc8   : > { %v564_v0 = vsel %vm277_vm0, %v540_v48, 0.0  ;;  %v1003_v27 = vpop.eup %1002  ;;  %v380_v32 = vsel %vm277_vm0, %v1001_v10, 0.0  ;;  %1020 = vpow2.f32 %v364_v28 }
  0xc9   : > { %v489_v11 = vpop.permute.xlu1 %488  ;;  %565 = vadd.xlane.f32.xlu0 %v564_v0  ;;  %v374_v34 = vsel %vm277_vm0, %v1003_v27, 0.0  ;;  %1022 = vpow2.f32 %v366_v33  ;;  %v501_v27 = vpop.permute.xlu0 %500 }
  0xca   : > { %vm525_vm6 = vcmp.eq.s32.totalorder %v1305_v5, %v489_v11  ;;  %1024 = vpow2.f32 %v368_v36  ;;  %vm529_vm10 = vcmp.eq.s32.totalorder %v1305_v5, %v501_v27 }
  0xcb   : > { %v541_v16 = vsel %vm525_vm6, %v1190_v9, 0.0  ;;  %v1005_v9 = vpop.eup %1004  ;;  %1026 = vpow2.f32 %v370_v40 }
  0xcc   : > { %v567_v23 = vsel %vm277_vm0, %v541_v16, 0.0  ;;  %v1007_v35 = vpop.eup %1006  ;;  %v383_v37 = vsel %vm277_vm0, %v1005_v9, 0.0  ;;  %1028 = vpow2.f32 %v372_v45 }
  0xcd   : > { %568 = vadd.xlane.f32.xlu1 %v567_v23  ;;  %378 = vadd.xlane.f32.xlu0 %v377_v24  ;;  %v1009_v38 = vpop.eup %1008  ;;  %v386_v2 = vsel %vm277_vm0, %v1007_v35, 0.0  ;;  %v492_v42 = vpop.permute.xlu1 %491 }
  0xce   : > { %v1011_v41 = vpop.eup %1010  ;;  %v389_v1 = vsel %vm277_vm0, %v1009_v38, 0.0  ;;  %vm526_vm7 = vcmp.eq.s32.totalorder %v1305_v5, %v492_v42  ;;  %v507_v6 = vpop.permute.xlu0 %506 }
  0xcf   : > { %v1013_v43 = vpop.eup %1012  ;;  %v392_v46 = vsel %vm277_vm0, %v1011_v41, 0.0  ;;  %v542_v33 = vsel %vm526_vm7, %v1203_v14, 0.0  ;;  %v545_v41 = vsel %vm529_vm10, %v1210_v17, 0.0  ;;  %vm531_vm12 = vcmp.eq.s32.totalorder %v1305_v5, %v507_v6 }
  0xd0   : > { %v1015_v44 = vpop.eup %1014  ;;  %v395_v3 = vsel %vm277_vm0, %v1013_v43, 0.0  ;;  %v570_v35 = vsel %vm277_vm0, %v542_v33, 0.0  ;;  %v579_v42 = vsel %vm277_vm0, %v545_v41, 0.0  ;;  %v1415_v6 = vstv %s972_s19 }
  0xd1   : > { %375 = vadd.xlane.f32.xlu1 %v374_v34  ;;  %381 = vadd.xlane.f32.xlu0 %v380_v32  ;;  %v495_v47 = vpop.permute.xlu1 %494  ;;  %v1017_v48 = vpop.eup %1016  ;;  %v398_v0 = vsel %vm277_vm0, %v1015_v44, 0.0  ;;  %v547_v44 = vsel %vm531_vm12, %v1220_v21, 0.0 }
  0xd2   : > { %v401_v12 = vsel %vm277_vm0, %v1017_v48, 0.0  ;;  %vm527_vm8 = vcmp.eq.s32.totalorder %v1305_v5, %v495_v47  ;;  %v513_v40 = vpop.permute.xlu0 %512  ;;  %v585_v45 = vsel %vm277_vm0, %v547_v44, 0.0 }
  0xd3   : > { %vm533_vm14 = vcmp.eq.s32.totalorder %v1305_v5, %v513_v40 }
  0xd4   : > { %v1019_v7 = vpop.eup %1018 }
  0xd5   : > { %384 = vadd.xlane.f32.xlu1 %v383_v37  ;;  %387 = vadd.xlane.f32.xlu0 %v386_v2  ;;  %v1021_v11 = vpop.eup %1020  ;;  %v404_v15 = vsel %vm277_vm0, %v1019_v7, 0.0  ;;  %v498_v10 = vpop.permute.xlu1 %497  ;;  %v543_v37 = vsel %vm527_vm8, %v1200_v13, 0.0 }
  0xd6   : > { %v1023_v16 = vpop.eup %1022  ;;  %v407_v20 = vsel %vm277_vm0, %v1021_v11, 0.0  ;;  %vm528_vm9 = vcmp.eq.s32.totalorder %v1305_v5, %v498_v10  ;;  %v573_v14 = vsel %vm277_vm0, %v543_v37, 0.0  ;;  %v519_v17 = vpop.permute.xlu0 %518 }
  0xd7   : > { %v1025_v19 = vpop.eup %1024  ;;  %v410_v23 = vsel %vm277_vm0, %v1023_v16, 0.0  ;;  %v544_v38 = vsel %vm528_vm9, %v1213_v18, 0.0  ;;  %vm535_vm1 = vcmp.eq.s32.totalorder %v1305_v5, %v519_v17 }
  0xd8   : > { %v1027_v24 = vpop.eup %1026  ;;  %v413_v31 = vsel %vm277_vm0, %v1025_v19, 0.0  ;;  %v576_v39 = vsel %vm277_vm0, %v544_v38, 0.0  ;;  %v551_v47 = vsel %vm535_vm1, %v1240_v29, 0.0 }
  0xd9   : > { %390 = vadd.xlane.f32.xlu1 %v389_v1  ;;  %393 = vadd.xlane.f32.xlu0 %v392_v46  ;;  %v504_v28 = vpop.permute.xlu1 %503  ;;  %v416_v32 = vsel %vm277_vm0, %v1027_v24, 0.0  ;;  %v1029_v9 = vpop.eup %1028  ;;  %v549_v46 = vsel %vm533_vm14, %v1230_v25, 0.0  ;;  %v597_v48 = vsel %vm277_vm0, %v551_v47, 0.0 }
  0xda   : > { %v419_v34 = vsel %vm277_vm0, %v1029_v9, 0.0  ;;  %vm530_vm11 = vcmp.eq.s32.totalorder %v1305_v5, %v504_v28  ;;  %v591_v21 = vsel %vm277_vm0, %v549_v46, 0.0 }
  0xdb   : > { %v546_v2 = vsel %vm530_vm11, %v1223_v22, 0.0 }
  0xdc   : > { %v582_v18 = vsel %vm277_vm0, %v546_v2, 0.0 }
  0xdd   : > { %396 = vadd.xlane.f32.xlu1 %v395_v3  ;;  %399 = vadd.xlane.f32.xlu0 %v398_v0  ;;  %v510_v36 = vpop.permute.xlu1 %509 }
  0xde   : > { %vm532_vm13 = vcmp.eq.s32.totalorder %v1305_v5, %v510_v36 }
  0xdf   : > { %v548_v43 = vsel %vm532_vm13, %v1233_v26, 0.0 }
  0xe0   : > { %v588_v22 = vsel %vm277_vm0, %v548_v43, 0.0 }
  0xe1   : > { %402 = vadd.xlane.f32.xlu1 %v401_v12  ;;  %405 = vadd.xlane.f32.xlu0 %v404_v15  ;;  %v516_v13 = vpop.permute.xlu1 %515 }
  0xe2   : > { %vm534_vm15 = vcmp.eq.s32.totalorder %v1305_v5, %v516_v13 }
  0xe3   : > { %v550_v1 = vsel %vm534_vm15, %v1243_v30, 0.0 }
  0xe4   : > { %v594_v26 = vsel %vm277_vm0, %v550_v1, 0.0 }
  0xe5   : > { %408 = vadd.xlane.f32.xlu1 %v407_v20  ;;  %411 = vadd.xlane.f32.xlu0 %v410_v23  ;;  %v1410_v23 = vshrl.u32 %v226_v63, 7 }
  0xe7   : > { %v228_v9 = vadd.s32 8, %v1410_v23  ;;  %v229_v63 = vadd.s32 16, %v1410_v23  ;;  %v230_v37 = vadd.s32 24, %v1410_v23  ;;  %v1427_v41 = vadd.s32 %v1415_v6, %v1410_v23 }
  0xe9   : > { %414 = vadd.xlane.f32.xlu1 %v413_v31  ;;  %417 = vadd.xlane.f32.xlu0 %v416_v32  ;;  %v1423_v2 = vadd.s32 %v1415_v6, %v228_v9  ;;  %v1432_v44 = vadd.s32 %v1415_v6, %v229_v63  ;;  %vm261_vm2 = vcmp.lt.s32.totalorder %v1427_v41, 300 }
  0xeb   : > { %vm262_vm0 = vcmp.lt.s32.totalorder %v1423_v2, 300  ;;  %vm263_vm3 = vcmp.lt.s32.totalorder %v1432_v44, 300 }
  0xed   : > { %420 = vadd.xlane.f32.xlu1 %v419_v34  ;;  %571 = vadd.xlane.f32.xlu0 %v570_v35 }
  0xf1   : > { %574 = vadd.xlane.f32.xlu1 %v573_v14  ;;  %577 = vadd.xlane.f32.xlu0 %v576_v39 }
  0xf5   : > { %583 = vadd.xlane.f32.xlu0 %v582_v18  ;;  %580 = vadd.xlane.f32.xlu1 %v579_v42 }
  0xf9   : > { %589 = vadd.xlane.f32.xlu0 %v588_v22  ;;  %586 = vadd.xlane.f32.xlu1 %v585_v45  ;;  %v1435_v22 = vadd.s32 %v1415_v6, %v230_v37  ;;  %v231_v45 = vadd.s32 32, %v1410_v23 }
  0xfb   : > { %vm264_vm4 = vcmp.lt.s32.totalorder %v1435_v22, 300 }
  0xfd   : > { %595 = vadd.xlane.f32.xlu0 %v594_v26  ;;  %592 = vadd.xlane.f32.xlu1 %v591_v21 }
 0x101   : > { %598 = vadd.xlane.f32.xlu1 %v597_v48 }
 0x146   : > { %v557_v0 = vpop.xlane.xlu1 %556 }
 0x14a   : > { %v554_v3 = vpop.xlane.xlu0 %553 }
 0x14e   : > { %v560_v7 = vpop.xlane.xlu0 %559  ;;  %v1403_v11 = vpop.xlane.xlu1 %562 }
 0x152   : > { %v1405_v30 = vpop.xlane.xlu0 %565 }
 0x156   : > { %v1407_v25 = vpop.xlane.xlu1 %568  ;;  %v379_v5 = vpop.xlane.xlu0 %378 }
 0x157   : > { %1030 = vlog2.f32 %v379_v5 }
 0x15a   : > { %v376_v12 = vpop.xlane.xlu1 %375  ;;  %v382_v15 = vpop.xlane.xlu0 %381 }
 0x15b   : > { %1032 = vlog2.f32 %v376_v12 }
 0x15c   : > { %1034 = vlog2.f32 %v382_v15 }
 0x15e   : > { %v385_v29 = vpop.xlane.xlu1 %384  ;;  %v388_v16 = vpop.xlane.xlu0 %387 }
 0x15f   : > { %1036 = vlog2.f32 %v385_v29 }
 0x160   : > { %1038 = vlog2.f32 %v388_v16 }
 0x162   : > { %v391_v10 = vpop.xlane.xlu1 %390  ;;  %v394_v19 = vpop.xlane.xlu0 %393 }
 0x163   : > { %1040 = vlog2.f32 %v391_v10 }
 0x164   : > { %v1031_v20 = vpop.eup %1030  ;;  %1042 = vlog2.f32 %v394_v19 }
 0x165   : > { %v425_v24 = vmul.f32 0.6931472, %v1031_v20 }
 0x166   : > { %v397_v27 = vpop.xlane.xlu1 %396  ;;  %v400_v28 = vpop.xlane.xlu0 %399 }
 0x167   : > { %v455_v31 = vadd.f32 %v425_v24, %v1278_v52  ;;  %1044 = vlog2.f32 %v397_v27  ;;  %v233_v24 = vadd.s32 48, %v1410_v23 }
 0x168   : > { %v1033_v32 = vpop.eup %1032  ;;  %1046 = vlog2.f32 %v400_v28 }
 0x169   : > { %v1035_v33 = vpop.eup %1034  ;;  %v601_v34 = vsub.f32 %v455_v31, %v557_v0  ;;  %v423_v35 = vmul.f32 0.6931472, %v1033_v32 }
 0x16a   : > { %v427_v36 = vmul.f32 0.6931472, %v1035_v33  ;;  %v403_v38 = vpop.xlane.xlu1 %402  ;;  %v406_v14 = vpop.xlane.xlu0 %405 }
 0x16b   : > { %v1419_v39 = vmax.f32 %v601_v34, 0.0  ;;  %v454_v52 = vadd.f32 %v423_v35, %v1274_v50  ;;  %1048 = vlog2.f32 %v403_v38  ;;  %v234_v38 = vadd.s32 56, %v1410_v23 }
 0x16c   : > { %v1037_v40 = vpop.eup %1036  ;;  %v456_v13 = vadd.f32 %v427_v36, %v1272_v49  ;;  %1050 = vlog2.f32 %v406_v14 }
 0x16d   : > { %v1039_v18 = vpop.eup %1038  ;;  %v633_v42 = vsub.f32 0.0, %v1419_v39  ;;  %v600_v43 = vsub.f32 %v454_v52, %v554_v3  ;;  %v429_v50 = vmul.f32 0.6931472, %v1037_v40 }
 0x16e   : > { %v602_v17 = vsub.f32 %v456_v13, %v560_v7  ;;  %v431_v1 = vmul.f32 0.6931472, %v1039_v18  ;;  %v409_v46 = vpop.xlane.xlu1 %408  ;;  %v412_v26 = vpop.xlane.xlu0 %411  ;;  %v232_v7 = vadd.s32 40, %v1410_v23 }
 0x16f   : > { %v650_v21 = vmul.f32 1.442695, %v633_v42  ;;  %v1438_v49 = vmax.f32 %v600_v43, 0.0  ;;  %v457_v47 = vadd.f32 %v429_v50, %v1276_v51  ;;  %1052 = vlog2.f32 %v409_v46 }
 0x170   : > { %v1041_v48 = vpop.eup %1040  ;;  %v1441_v3 = vmax.f32 %v602_v17, 0.0  ;;  %v458_v0 = vadd.f32 %v431_v1, %v1282_v54  ;;  %1054 = vlog2.f32 %v412_v26  ;;  %v1469_v46 = vadd.s32 %v1415_v6, %v231_v45 }
 0x171   : > { %v1043_v5 = vpop.eup %1042  ;;  %1056 = vpow2.f32 %v650_v21  ;;  %v632_v12 = vsub.f32 0.0, %v1438_v49  ;;  %v603_v15 = vsub.f32 %v457_v47, %v1403_v11  ;;  %v433_v29 = vmul.f32 0.6931472, %v1041_v48 }
 0x172   : > { %v634_v16 = vsub.f32 0.0, %v1441_v3  ;;  %v604_v51 = vsub.f32 %v458_v0, %v1405_v30  ;;  %v435_v10 = vmul.f32 0.6931472, %v1043_v5  ;;  %v415_v19 = vpop.xlane.xlu1 %414  ;;  %v418_v20 = vpop.xlane.xlu0 %417  ;;  %v1472_v26 = vadd.s32 %v1415_v6, %v232_v7 }
 0x173   : > { %v648_v54 = vmul.f32 1.442695, %v632_v12  ;;  %v1450_v27 = vmax.f32 %v603_v15, 0.0  ;;  %v459_v28 = vadd.f32 %v433_v29, %v1280_v53  ;;  %1058 = vlog2.f32 %v415_v19 }
 0x174   : > { %v1045_v31 = vpop.eup %1044  ;;  %v652_v32 = vmul.f32 1.442695, %v634_v16  ;;  %v1453_v9 = vmax.f32 %v604_v51, 0.0  ;;  %1060 = vlog2.f32 %v418_v20  ;;  %v460_v11 = vadd.f32 %v435_v10, %v1286_v56 }
 0x175   : > { %v1047_v33 = vpop.eup %1046  ;;  %1062 = vpow2.f32 %v648_v54  ;;  %v635_v30 = vsub.f32 0.0, %v1450_v27  ;;  %v605_v34 = vsub.f32 %v459_v28, %v1407_v25  ;;  %v437_v35 = vmul.f32 0.6931472, %v1045_v31 }
 0x176   : > { %1064 = vpow2.f32 %v652_v32  ;;  %v636_v63 = vsub.f32 0.0, %v1453_v9  ;;  %v439_v36 = vmul.f32 0.6931472, %v1047_v33  ;;  %v421_v53 = vpop.xlane.xlu1 %420  ;;  %v572_v37 = vpop.xlane.xlu0 %571  ;;  %v235_v25 = vadd.s32 64, %v1410_v23 }
 0x177   : > { %v654_v14 = vmul.f32 1.442695, %v635_v30  ;;  %v1460_v52 = vmax.f32 %v605_v34, 0.0  ;;  %1066 = vlog2.f32 %v421_v53  ;;  %v606_v56 = vsub.f32 %v460_v11, %v572_v37 }
 0x178   : > { %v1049_v40 = vpop.eup %1048  ;;  %v656_v13 = vmul.f32 1.442695, %v636_v63  ;;  %v461_v18 = vadd.f32 %v437_v35, %v1284_v55  ;;  %v462_v42 = vadd.f32 %v439_v36, %v1290_v58  ;;  %v1476_v15 = vadd.s32 %v1415_v6, %v233_v24 }
 0x179   : > { %v1051_v43 = vpop.eup %1050  ;;  %1068 = vpow2.f32 %v654_v14  ;;  %v637_v50 = vsub.f32 0.0, %v1460_v52  ;;  %v441_v17 = vmul.f32 0.6931472, %v1049_v40  ;;  %v1466_v1 = vmax.f32 %v606_v56, 0.0 }
 0x17a   : > { %1070 = vpow2.f32 %v656_v13  ;;  %v443_v21 = vmul.f32 0.6931472, %v1051_v43  ;;  %v575_v55 = vpop.xlane.xlu1 %574  ;;  %v578_v47 = vpop.xlane.xlu0 %577  ;;  %v1479_v29 = vadd.s32 %v1415_v6, %v234_v38  ;;  %v1482_v45 = vadd.s32 %v1415_v6, %v235_v25 }
 0x17b   : > { %v658_v48 = vmul.f32 1.442695, %v637_v50  ;;  %v638_v58 = vsub.f32 0.0, %v1466_v1  ;;  %v607_v0 = vsub.f32 %v461_v18, %v575_v55  ;;  %v608_v5 = vsub.f32 %v462_v42, %v578_v47 }
 0x17c   : > { %v1053_v12 = vpop.eup %1052  ;;  %v463_v7 = vadd.f32 %v441_v17, %v1288_v57  ;;  %v1491_v28 = vadd.s32 72, %v1410_v23  ;;  %v464_v32 = vadd.f32 %v443_v21, %v1294_v60  ;;  %v1497_v63 = vadd.s32 80, %v1410_v23 }
 0x17d   : > { %v1055_v16 = vpop.eup %1054  ;;  %1072 = vpow2.f32 %v658_v48  ;;  %v445_v51 = vmul.f32 0.6931472, %v1053_v12  ;;  %v660_v10 = vmul.f32 1.442695, %v638_v58  ;;  %v1485_v19 = vmax.f32 %v607_v0, 0.0 }
 0x17e   : > { %v1057_v20 = vpop.eup %1056  ;;  %v447_v54 = vmul.f32 0.6931472, %v1055_v16  ;;  %v1488_v24 = vmax.f32 %v608_v5, 0.0  ;;  %v581_v31 = vpop.xlane.xlu1 %580  ;;  %vm265_vm5 = vcmp.lt.s32.totalorder %v1469_v46, 300  ;;  %vm266_vm6 = vcmp.lt.s32.totalorder %v1472_v26, 300 }
 0x17f   : > { %v584_v11 = vpop.xlane.xlu0 %583  ;;  %v681_v57 = vsub.f32 1.0, %v1057_v20  ;;  %1074 = vpow2.f32 %v660_v10  ;;  %v639_v33 = vsub.f32 0.0, %v1485_v19  ;;  %v609_v30 = vsub.f32 %v463_v7, %v581_v31 }
 0x180   : > { %v1059_v34 = vpop.eup %1058  ;;  %v640_v35 = vsub.f32 0.0, %v1488_v24  ;;  %v610_v36 = vsub.f32 %v464_v32, %v584_v11  ;;  %v465_v53 = vadd.f32 %v445_v51, %v1292_v59  ;;  %v466_v43 = vadd.f32 %v447_v54, %v1298_v62 }
 0x181   : > { %v1061_v37 = vpop.eup %1060  ;;  %v697_v38 = vmul.f32 %v681_v57, %v681_v57  ;;  %v449_v14 = vmul.f32 0.6931472, %v1059_v34  ;;  %v662_v56 = vmul.f32 1.442695, %v639_v33  ;;  %v1500_v60 = vmax.f32 %v609_v30, 0.0 }
 0x182   : > { %v1063_v40 = vpop.eup %1062  ;;  %v1503_v13 = vmul.f32 0.6931472, %v1061_v37  ;;  %v664_v18 = vmul.f32 1.442695, %v640_v35  ;;  %v1505_v25 = vmax.f32 %v610_v36, 0.0  ;;  %v587_v42 = vpop.xlane.xlu1 %586  ;;  %vm267_vm7 = vcmp.lt.s32.totalorder %v1476_v15, 300 }
 0x183   : > { %v1065_v50 = vpop.eup %1064  ;;  %v713_v17 = vmul.f32 %v697_v38, %v697_v38  ;;  %v680_v59 = vsub.f32 1.0, %v1063_v40  ;;  %1076 = vpow2.f32 %v662_v56  ;;  %v641_v21 = vsub.f32 0.0, %v1500_v60  ;;  %v590_v55 = vpop.xlane.xlu0 %589 }
 0x184   : > { %v1067_v47 = vpop.eup %1066  ;;  %v682_v48 = vsub.f32 1.0, %v1065_v50  ;;  %1078 = vpow2.f32 %v664_v18  ;;  %v642_v58 = vsub.f32 0.0, %v1505_v25  ;;  %v611_v0 = vsub.f32 %v465_v53, %v587_v42 }
 0x185   : > { %v729_v5 = vmul.f32 %v713_v17, %v697_v38  ;;  %v696_v12 = vmul.f32 %v680_v59, %v680_v59  ;;  %v453_v7 = vmul.f32 0.6931472, %v1067_v47  ;;  %v666_v16 = vmul.f32 1.442695, %v641_v21 }
 0x186   : > { %v1069_v62 = vpop.eup %1068  ;;  %v698_v51 = vmul.f32 %v682_v48, %v682_v48  ;;  %v668_v10 = vmul.f32 1.442695, %v642_v58  ;;  %v1512_v20 = vmax.f32 %v611_v0, 0.0  ;;  %v612_v54 = vsub.f32 %v466_v43, %v590_v55  ;;  %v593_v38 = vpop.xlane.xlu1 %592 }
 0x187   : > { %v1071_v31 = vpop.eup %1070  ;;  %v745_v32 = vmul.f32 %v729_v5, %v1419_v39  ;;  %v712_v11 = vmul.f32 %v696_v12, %v696_v12  ;;  %v683_v57 = vsub.f32 1.0, %v1069_v62  ;;  %1080 = vpow2.f32 %v666_v16 }
 0x188   : > { %v714_v33 = vmul.f32 %v698_v51, %v698_v51  ;;  %v684_v30 = vsub.f32 1.0, %v1071_v31  ;;  %1082 = vpow2.f32 %v668_v10  ;;  %v643_v34 = vsub.f32 0.0, %v1512_v20 }
 0x189   : > { %v1519_v35 = vsel %vm262_vm0, %v745_v32, 0.0  ;;  %v728_v36 = vmul.f32 %v712_v11, %v696_v12  ;;  %v699_v53 = vmul.f32 %v683_v57, %v683_v57  ;;  %v1521_v37 = vmax.f32 %v612_v54, 0.0 }
 0x18a   : > { %v1073_v39 = vpop.eup %1072  ;;  %v730_v56 = vmul.f32 %v714_v33, %v698_v51  ;;  %v700_v40 = vmul.f32 %v684_v30, %v684_v30  ;;  %v670_v18 = vmul.f32 1.442695, %v643_v34  ;;  %v467_v42 = vadd.f32 %v449_v14, %v1296_v61  ;;  %v596_v51 = vpop.xlane.xlu0 %595 }
 0x18b   : > { %v744_v43 = vmul.f32 %v728_v36, %v1438_v49  ;;  %v715_v50 = vmul.f32 %v699_v53, %v699_v53  ;;  %v685_v17 = vsub.f32 1.0, %v1073_v39  ;;  %v644_v2 = vsub.f32 0.0, %v1521_v37  ;;  %v599_v32 = vpop.xlane.xlu1 %598 }
 0x18c   : > { %v1075_v59 = vpop.eup %1074  ;;  %v746_v21 = vmul.f32 %v730_v56, %v1441_v3  ;;  %v716_v55 = vmul.f32 %v700_v40, %v700_v40  ;;  %1084 = vpow2.f32 %v670_v18  ;;  %v613_v47 = vsub.f32 %v467_v42, %v593_v38 }
 0x18d   : > { %v1531_v48 = vsel %vm261_vm2, %v744_v43, 0.0  ;;  %v731_v58 = vmul.f32 %v715_v50, %v699_v53  ;;  %v701_v61 = vmul.f32 %v685_v17, %v685_v17  ;;  %v686_v14 = vsub.f32 1.0, %v1075_v59 }
 0x18e   : > { %v1535_v49 = vsel %vm263_vm3, %v746_v21, 0.0  ;;  %v732_v0 = vmul.f32 %v716_v55, %v700_v40  ;;  %v672_v5 = vmul.f32 1.442695, %v644_v2  ;;  %v1537_v12 = vmax.f32 %v613_v47, 0.0 }
 0x18f   : > { %v747_v3 = vmul.f32 %v731_v58, %v1450_v27  ;;  %v717_v16 = vmul.f32 %v701_v61, %v701_v61  ;;  %v702_v62 = vmul.f32 %v686_v14, %v686_v14  ;;  %v468_v41 = vadd.f32 %v1503_v13, %v1309_v8 }
 0x190   : > { %v1077_v10 = vpop.eup %1076  ;;  %v748_v54 = vmul.f32 %v732_v0, %v1453_v9  ;;  %vm268_vm8 = vcmp.lt.s32.totalorder %v1479_v29, 300  ;;  %1086 = vpow2.f32 %v672_v5  ;;  %v645_v44 = vsub.f32 0.0, %v1537_v12 }
 0x191   : > { %v469_v31 = vadd.f32 %v453_v7, %v1302_v4  ;;  %v1079_v11 = vpop.eup %1078  ;;  %v1548_v27 = vsel %vm264_vm4, %v747_v3, 0.0  ;;  %v733_v57 = vmul.f32 %v717_v16, %v701_v61  ;;  %v718_v33 = vmul.f32 %v702_v62, %v702_v62 }
 0x192   : > { %v687_v8 = vsub.f32 1.0, %v1077_v10  ;;  %v1552_v13 = vsel %vm265_vm5, %v748_v54, 0.0  ;;  %v688_v9 = vsub.f32 1.0, %v1079_v11  ;;  %v674_v30 = vmul.f32 1.442695, %v645_v44 }
 0x193   : > { %v614_v34 = vsub.f32 %v468_v41, %v596_v51  ;;  %v749_v36 = vmul.f32 %v733_v57, %v1460_v52  ;;  %v734_v53 = vmul.f32 %v718_v33, %v702_v62  ;;  %v615_v7 = vsub.f32 %v469_v31, %v599_v32 }
 0x194   : > { %v703_v4 = vmul.f32 %v687_v8, %v687_v8  ;;  %v1081_v38 = vpop.eup %1080  ;;  %v704_v39 = vmul.f32 %v688_v9, %v688_v9  ;;  %v254_v22 = vadd.s32 %v1415_v6, %v1491_v28  ;;  %1088 = vpow2.f32 %v674_v30 }
 0x195   : > { %v1557_v56 = vmax.f32 %v614_v34, 0.0  ;;  %v1083_v40 = vpop.eup %1082  ;;  %v1561_v46 = vsel %vm266_vm6, %v749_v36, 0.0  ;;  %v750_v18 = vmul.f32 %v734_v53, %v1466_v1  ;;  %v689_v52 = vsub.f32 1.0, %v1081_v38 }
 0x196   : > { %v719_v42 = vmul.f32 %v703_v4, %v703_v4  ;;  %v720_v43 = vmul.f32 %v704_v39, %v704_v39  ;;  %v690_v50 = vsub.f32 1.0, %v1083_v40  ;;  %v1565_v2 = vmax.f32 %v615_v7, 0.0 }
 0x197   : > { %v646_v17 = vsub.f32 0.0, %v1557_v56  ;;  %v1569_v28 = vsel %vm267_vm7, %v750_v18, 0.0  ;;  %v705_v21 = vmul.f32 %v689_v52, %v689_v52  ;;  %v255_v26 = vadd.s32 %v1415_v6, %v1497_v63 }
 0x198   : > { %v735_v59 = vmul.f32 %v719_v42, %v703_v4  ;;  %v736_v55 = vmul.f32 %v720_v43, %v704_v39  ;;  %v706_v47 = vmul.f32 %v690_v50, %v690_v50  ;;  %v647_v58 = vsub.f32 0.0, %v1565_v2 }
 0x199   : > { %v676_v1 = vmul.f32 1.442695, %v646_v17  ;;  %v1085_v61 = vpop.eup %1084  ;;  %vm269_vm9 = vcmp.lt.s32.totalorder %v1482_v45, 300  ;;  %v721_v0 = vmul.f32 %v705_v21, %v705_v21  ;;  %v238_v15 = vadd.s32 88, %v1410_v23 }
 0x19a   : > { %v751_v14 = vmul.f32 %v735_v59, %v1485_v19  ;;  %v752_v5 = vmul.f32 %v736_v55, %v1488_v24  ;;  %v722_v3 = vmul.f32 %v706_v47, %v706_v47  ;;  %v691_v16 = vsub.f32 1.0, %v1085_v61 }
 0x19b   : > { %1090 = vpow2.f32 %v676_v1  ;;  %vm270_vm10 = vcmp.lt.s32.totalorder %v254_v22, 300  ;;  %v737_v62 = vmul.f32 %v721_v0, %v705_v21  ;;  %v678_v41 = vmul.f32 1.442695, %v647_v58 }
 0x19c   : > { %v1580_v63 = vsel %vm268_vm8, %v751_v14, 0.0  ;;  %v1582_v51 = vsel %vm269_vm9, %v752_v5, 0.0  ;;  %vm271_vm11 = vcmp.lt.s32.totalorder %v255_v26, 300  ;;  %v738_v19 = vmul.f32 %v722_v3, %v706_v47 }
 0x19d   : > { %v707_v45 = vmul.f32 %v691_v16, %v691_v16  ;;  %v1087_v10 = vpop.eup %1086  ;;  %v753_v54 = vmul.f32 %v737_v62, %v1500_v60  ;;  %v256_v24 = vadd.s32 %v1415_v6, %v238_v15  ;;  %v239_v44 = vadd.s32 96, %v1410_v23 }
 0x19e   : > { %1092 = vpow2.f32 %v678_v41  ;;  %v754_v29 = vmul.f32 %v738_v19, %v1505_v25  ;;  %v692_v32 = vsub.f32 1.0, %v1087_v10  ;;  %v240_v60 = vadd.s32 104, %v1410_v23 }
 0x19f   : > { %v723_v31 = vmul.f32 %v707_v45, %v707_v45  ;;  %v1588_v11 = vsel %vm270_vm10, %v753_v54, 0.0  ;;  %vm272_vm12 = vcmp.lt.s32.totalorder %v256_v24, 300  ;;  %v257_v30 = vadd.s32 %v1415_v6, %v239_v44 }
 0x1a0   : > { %v1590_v57 = vsel %vm271_vm11, %v754_v29, 0.0  ;;  %v708_v8 = vmul.f32 %v692_v32, %v692_v32  ;;  %v258_v38 = vadd.s32 %v1415_v6, %v240_v60  ;;  %v241_v18 = vadd.s32 112, %v1410_v23 }
 0x1a1   : > { %v739_v33 = vmul.f32 %v723_v31, %v707_v45  ;;  %v1089_v9 = vpop.eup %1088  ;;  %vm273_vm13 = vcmp.lt.s32.totalorder %v257_v30, 300  ;;  %v242_v59 = vadd.s32 120, %v1410_v23 }
 0x1a2   : > { %v724_v36 = vmul.f32 %v708_v8, %v708_v8  ;;  %v693_v53 = vsub.f32 1.0, %v1089_v9  ;;  %vm274_vm14 = vcmp.lt.s32.totalorder %v258_v38, 300  ;;  %v259_v21 = vadd.s32 %v1415_v6, %v241_v18 }
 0x1a3   : > { %v755_v34 = vmul.f32 %v739_v33, %v1512_v20  ;;  %v260_v58 = vadd.s32 %v1415_v6, %v242_v59 }
 0x1a4   : > { %v740_v25 = vmul.f32 %v724_v36, %v708_v8  ;;  %v709_v7 = vmul.f32 %v693_v53, %v693_v53  ;;  %vm275_vm15 = vcmp.lt.s32.totalorder %v259_v21, 300 }
 0x1a5   : > { %v1595_v4 = vsel %vm272_vm12, %v755_v34, 0.0  ;;  %vm276_vm1 = vcmp.lt.s32.totalorder %v260_v58, 300 }
 0x1a6   : > { %v756_v39 = vmul.f32 %v740_v25, %v1521_v37  ;;  %v725_v22 = vmul.f32 %v709_v7, %v709_v7 }
 0x1a8   : > { %v1091_v40 = vpop.eup %1090  ;;  %v1600_v42 = vsel %vm273_vm13, %v756_v39, 0.0  ;;  %v741_v52 = vmul.f32 %v725_v22, %v709_v7 }
 0x1a9   : > { %v694_v43 = vsub.f32 1.0, %v1091_v40 }
 0x1aa   : > { %v757_v50 = vmul.f32 %v741_v52, %v1537_v12 }
 0x1ab   : > { %v1093_v20 = vpop.eup %1092  ;;  %v710_v17 = vmul.f32 %v694_v43, %v694_v43 }
 0x1ac   : > { %v695_v26 = vsub.f32 1.0, %v1093_v20  ;;  %v1605_v55 = vsel %vm274_vm14, %v757_v50, 0.0 }
 0x1ad   : > { %v726_v37 = vmul.f32 %v710_v17, %v710_v17 }
 0x1ae   : > { %v711_v47 = vmul.f32 %v695_v26, %v695_v26 }
 0x1af   : > { %v742_v1 = vmul.f32 %v726_v37, %v710_v17 }
 0x1b0   : > { %v727_v61 = vmul.f32 %v711_v47, %v711_v47 }
 0x1b1   : > { %v758_v14 = vmul.f32 %v742_v1, %v1557_v56 }
 0x1b2   : > { %v743_v0 = vmul.f32 %v727_v61, %v711_v47  ;;  %779 = sbr.rel (%p973_p4) target bundleno = 448 (0x1c0), region = 32 }
 0x1b3   : > { %v1609_v15 = vsel %vm275_vm15, %v758_v14, 0.0 }
 0x1b4   : > { %v759_v23 = vmul.f32 %v743_v0, %v1565_v2 }
 0x1b6   : > { %v1612_v12 = vsel %vm276_vm1, %v759_v23, 0.0 }
 0x1b7   : > { %vm780_vm0 = vcmask 7168   ;;  %v1131_v5 = vmov 0.0  }
 0x1b8   : > { %781 = vst.msk [vmem:[#allocation2] sm:$0xff] %vm780_vm0, %v1131_v5  ;;  %782 = vst.msk [vmem:[#allocation2 + $0x8] sm:$0xff] %vm780_vm0, %v1131_v5 }
 0x1b9   : > { %783 = vst.msk [vmem:[#allocation2 + $0x10] sm:$0xff] %vm780_vm0, %v1131_v5  ;;  %784 = vst.msk [vmem:[#allocation2 + $0x18] sm:$0xff] %vm780_vm0, %v1131_v5 }
 0x1ba   : > { %785 = vst.msk [vmem:[#allocation2 + $0x20] sm:$0xff] %vm780_vm0, %v1131_v5  ;;  %786 = vst.msk [vmem:[#allocation2 + $0x28] sm:$0xff] %vm780_vm0, %v1131_v5 }
 0x1bb   : > { %787 = vst.msk [vmem:[#allocation2 + $0x30] sm:$0xff] %vm780_vm0, %v1131_v5  ;;  %788 = vst.msk [vmem:[#allocation2 + $0x38] sm:$0xff] %vm780_vm0, %v1131_v5 }
 0x1bc   : > { %789 = vst.msk [vmem:[#allocation2 + $0x40] sm:$0xff] %vm780_vm0, %v1131_v5  ;;  %790 = vst.msk [vmem:[#allocation2 + $0x48] sm:$0xff] %vm780_vm0, %v1131_v5 }
 0x1bd   : > { %791 = vst.msk [vmem:[#allocation2 + $0x50] sm:$0xff] %vm780_vm0, %v1131_v5  ;;  %792 = vst.msk [vmem:[#allocation2 + $0x58] sm:$0xff] %vm780_vm0, %v1131_v5 }
 0x1be   : > { %793 = vst.msk [vmem:[#allocation2 + $0x60] sm:$0xff] %vm780_vm0, %v1131_v5  ;;  %794 = vst.msk [vmem:[#allocation2 + $0x68] sm:$0xff] %vm780_vm0, %v1131_v5 }
 0x1bf   : > { %795 = vst.msk [vmem:[#allocation2 + $0x70] sm:$0xff] %vm780_vm0, %v1131_v5  ;;  %796 = vst.msk [vmem:[#allocation2 + $0x78] sm:$0xff] %vm780_vm0, %v1131_v5 }
 0x1c0 PF: > { %v797_v6 = vld [vmem:[#allocation2] sm:$0xff]  ;;  %vm829_vm2 = vcmask 7168   ;;  %v798_v56 = vld [vmem:[#allocation2 + $0x8] sm:$0xff]  ;;  %v799_v2 = vld [vmem:[#allocation2 + $0x10] sm:$0xff]  ;;  %p974_p5 = scmp.ne.s32.totalorder %s1154_s10, 2 }
 0x1c1   : > { %v813_v3 = vadd.f32 %v797_v6, %v1531_v48  ;;  %v814_v16 = vadd.f32 %v798_v56, %v1519_v35  ;;  %v815_v62 = vadd.f32 %v799_v2, %v1535_v49  ;;  %v800_v41 = vld [vmem:[#allocation2 + $0x18] sm:$0xff]  ;;  %v801_v19 = vld [vmem:[#allocation2 + $0x20] sm:$0xff]  ;;  %v802_v45 = vld [vmem:[#allocation2 + $0x28] sm:$0xff] }
 0x1c2   : > { %v816_v10 = vadd.f32 %v800_v41, %v1548_v27  ;;  %v817_v54 = vadd.f32 %v801_v19, %v1552_v13  ;;  %v818_v24 = vadd.f32 %v802_v45, %v1561_v46  ;;  %v803_v44 = vld [vmem:[#allocation2 + $0x30] sm:$0xff]  ;;  %v804_v29 = vld [vmem:[#allocation2 + $0x38] sm:$0xff] }
 0x1c3   : > { %v805_v31 = vld [vmem:[#allocation2 + $0x40] sm:$0xff]  ;;  %830 = vst.msk [vmem:[#allocation2] sm:$0xff] %vm829_vm2, %v813_v3  ;;  %831 = vst.msk [vmem:[#allocation2 + $0x8] sm:$0xff] %vm829_vm2, %v814_v16  ;;  %v819_v35 = vadd.f32 %v803_v44, %v1569_v28  ;;  %v820_v48 = vadd.f32 %v804_v29, %v1580_v63  ;;  %v806_v27 = vld [vmem:[#allocation2 + $0x48] sm:$0xff] }
 0x1c4   : > { %832 = vst.msk [vmem:[#allocation2 + $0x10] sm:$0xff] %vm829_vm2, %v815_v62  ;;  %v821_v49 = vadd.f32 %v805_v31, %v1582_v51  ;;  %v807_v32 = vld [vmem:[#allocation2 + $0x50] sm:$0xff]  ;;  %v808_v13 = vld [vmem:[#allocation2 + $0x58] sm:$0xff]  ;;  %833 = vst.msk [vmem:[#allocation2 + $0x18] sm:$0xff] %vm829_vm2, %v816_v10  ;;  %v822_v46 = vadd.f32 %v806_v27, %v1588_v11 }
 0x1c5   : > { %834 = vst.msk [vmem:[#allocation2 + $0x20] sm:$0xff] %vm829_vm2, %v817_v54  ;;  %835 = vst.msk [vmem:[#allocation2 + $0x28] sm:$0xff] %vm829_vm2, %v818_v24  ;;  %v823_v33 = vadd.f32 %v807_v32, %v1590_v57  ;;  %v824_v8 = vadd.f32 %v808_v13, %v1595_v4  ;;  %v809_v28 = vld [vmem:[#allocation2 + $0x60] sm:$0xff]  ;;  %v810_v9 = vld [vmem:[#allocation2 + $0x68] sm:$0xff] }
 0x1c6   : > { %v811_v63 = vld [vmem:[#allocation2 + $0x70] sm:$0xff]  ;;  %836 = vst.msk [vmem:[#allocation2 + $0x30] sm:$0xff] %vm829_vm2, %v819_v35  ;;  %837 = vst.msk [vmem:[#allocation2 + $0x38] sm:$0xff] %vm829_vm2, %v820_v48  ;;  %v825_v51 = vadd.f32 %v809_v28, %v1600_v42  ;;  %v826_v30 = vadd.f32 %v810_v9, %v1605_v55  ;;  %v812_v11 = vld [vmem:[#allocation2 + $0x78] sm:$0xff]  ;;  %849 = sbr.rel (%p974_p5) target bundleno = 506 (0x1fa), region = 36 }
 0x1c7   : > { %838 = vst.msk [vmem:[#allocation2 + $0x40] sm:$0xff] %vm829_vm2, %v821_v49  ;;  %v827_v60 = vadd.f32 %v811_v63, %v1609_v15  ;;  %839 = vst.msk [vmem:[#allocation2 + $0x48] sm:$0xff] %vm829_vm2, %v822_v46  ;;  %v828_v57 = vadd.f32 %v812_v11, %v1612_v12 }
 0x1c8   : > { %840 = vst.msk [vmem:[#allocation2 + $0x50] sm:$0xff] %vm829_vm2, %v823_v33  ;;  %841 = vst.msk [vmem:[#allocation2 + $0x58] sm:$0xff] %vm829_vm2, %v824_v8 }
 0x1c9   : > { %842 = vst.msk [vmem:[#allocation2 + $0x60] sm:$0xff] %vm829_vm2, %v825_v51  ;;  %843 = vst.msk [vmem:[#allocation2 + $0x68] sm:$0xff] %vm829_vm2, %v826_v30 }
 0x1ca   : > { %844 = vst.msk [vmem:[#allocation2 + $0x70] sm:$0xff] %vm829_vm2, %v827_v60  ;;  %845 = vst.msk [vmem:[#allocation2 + $0x78] sm:$0xff] %vm829_vm2, %v828_v57 }
 0x1cb   : > { %v850_v34 = vld [vmem:[#allocation2] sm:$0xff]  ;;  %v851_v36 = vld [vmem:[#allocation2 + $0x8] sm:$0xff]  ;;  %v852_v53 = vld [vmem:[#allocation2 + $0x10] sm:$0xff]  ;;  %vm904_vm3 = vcmask 0  }
 0x1cc   : > { %v853_v4 = vld [vmem:[#allocation2 + $0x18] sm:$0xff]  ;;  %v866_v25 = vsel %vm829_vm2, %v850_v34, 0.0  ;;  %v867_v7 = vsel %vm829_vm2, %v851_v36, 0.0  ;;  %v869_v38 = vsel %vm829_vm2, %v852_v53, 0.0  ;;  %v854_v39 = vld [vmem:[#allocation2 + $0x20] sm:$0xff]  ;;  %v855_v18 = vld [vmem:[#allocation2 + $0x28] sm:$0xff] }
 0x1cd   : > { %v868_v22 = vadd.f32 %v867_v7, %v866_v25  ;;  %v871_v40 = vsel %vm829_vm2, %v853_v4, 0.0  ;;  %v873_v52 = vsel %vm829_vm2, %v854_v39, 0.0  ;;  %v856_v43 = vld [vmem:[#allocation2 + $0x30] sm:$0xff]  ;;  %v875_v50 = vsel %vm829_vm2, %v855_v18, 0.0  ;;  %v857_v17 = vld [vmem:[#allocation2 + $0x38] sm:$0xff] }
 0x1ce   : > { %v877_v21 = vsel %vm829_vm2, %v856_v43, 0.0  ;;  %v858_v26 = vld [vmem:[#allocation2 + $0x40] sm:$0xff]  ;;  %v879_v37 = vsel %vm829_vm2, %v857_v17, 0.0  ;;  %v859_v47 = vld [vmem:[#allocation2 + $0x48] sm:$0xff] }
 0x1cf   : > { %v870_v42 = vadd.f32 %v869_v38, %v868_v22  ;;  %v881_v58 = vsel %vm829_vm2, %v858_v26, 0.0  ;;  %v860_v61 = vld [vmem:[#allocation2 + $0x50] sm:$0xff]  ;;  %v883_v0 = vsel %vm829_vm2, %v859_v47, 0.0  ;;  %v861_v15 = vld [vmem:[#allocation2 + $0x58] sm:$0xff] }
 0x1d0   : > { %v885_v12 = vsel %vm829_vm2, %v860_v61, 0.0  ;;  %v862_v5 = vld [vmem:[#allocation2 + $0x60] sm:$0xff]  ;;  %v887_v56 = vsel %vm829_vm2, %v861_v15, 0.0  ;;  %v863_v2 = vld [vmem:[#allocation2 + $0x68] sm:$0xff] }
 0x1d1   : > { %v872_v20 = vadd.f32 %v871_v40, %v870_v42  ;;  %v889_v16 = vsel %vm829_vm2, %v862_v5, 0.0  ;;  %v864_v62 = vld [vmem:[#allocation2 + $0x70] sm:$0xff]  ;;  %v891_v19 = vsel %vm829_vm2, %v863_v2, 0.0  ;;  %v865_v45 = vld [vmem:[#allocation2 + $0x78] sm:$0xff] }
 0x1d2   : > { %v893_v54 = vsel %vm829_vm2, %v864_v62, 0.0  ;;  %v895_v44 = vsel %vm829_vm2, %v865_v45, 0.0 }
 0x1d3   : > { %v874_v59 = vadd.f32 %v873_v52, %v872_v20 }
 0x1d5   : > { %v876_v55 = vadd.f32 %v875_v50, %v874_v59 }
 0x1d7   : > { %v878_v1 = vadd.f32 %v877_v21, %v876_v55 }
 0x1d9   : > { %v880_v14 = vadd.f32 %v879_v37, %v878_v1 }
 0x1db   : > { %v882_v23 = vadd.f32 %v881_v58, %v880_v14 }
 0x1dd   : > { %v884_v6 = vadd.f32 %v883_v0, %v882_v23 }
 0x1df   : > { %v886_v3 = vadd.f32 %v885_v12, %v884_v6 }
 0x1e1   : > { %v888_v41 = vadd.f32 %v887_v56, %v886_v3 }
 0x1e3   : > { %v890_v10 = vadd.f32 %v889_v16, %v888_v41 }
 0x1e5   : > { %v892_v24 = vadd.f32 %v891_v19, %v890_v10 }
 0x1e7   : > { %v894_v29 = vadd.f32 %v893_v54, %v892_v24 }
 0x1e9   : > { %v896_v31 = vadd.f32 %v895_v44, %v894_v29 }
 0x1eb   : > { %v897_v35 = vrot.slane %v896_v31, 4 }
 0x1ed   : > { %v898_v48 = vadd.f32 %v897_v35, %v896_v31 }
 0x1ef   : > { %v899_v49 = vrot.slane %v898_v48, 2 }
 0x1f1   : > { %v900_v27 = vadd.f32 %v899_v49, %v898_v48 }
 0x1f3   : > { %v901_v32 = vrot.slane %v900_v27, 1 }
 0x1f5   : > { %v902_v13 = vadd.f32 %v901_v32, %v900_v27 }
 0x1f7   : > { %v903_v46 = vmul.f32 0.0033333334, %v902_v13 }
 0x1f9   : > { %905 = vst.msk [vmem:[#allocation3] sm:$0x1] %vm904_vm3, %v903_v46 }
 0x1fa PF: > { %p983_p6 = scmp.eq.s32.totalorder %s1154_s10, 2  ;;  %s1132_s20 = smov [#allocation3]  }
 0x1fb   : > { %s913_s21 = sshll.u32 %s1132_s20, 4  ;;  %s914_s21 = int_to_ptr.vmem [resolvable:$true] %s913_s21 }
 0x1fc   : > { %s1094_s22 = scalar_lea.vmem %s914_s21, 16  ;;  %s1100_s23 = scalar_lea.vmem %s914_s21, 32 }
 0x1fd   : > { %p1095_p7 = scmp.ne.s32.totalorder %s914_s21, %s1094_s22  ;;  %p1101_p10 = scmp.lt.s32.totalorder %s914_s21, %s914_s21 }
 0x1fe   : > { %p1102_p11 = scmp.lt.s32.totalorder %s1100_s23, %s1094_s22 }
 0x1ff   : > { %p1096_p8 = pnand %p1095_p7, %p983_p6 }
 0x200   : > { %p1103_p12 = por %p1102_p11, %p1101_p10 }
 0x201   : > { %p1097_p9 = pneg %p1096_p8 }
 0x203   : > { %p1104_p13 = pnand %p1103_p12, %p1097_p9 }
 0x205   : > { %1107 = shalt.err (!%p1104_p13)
}
 0x206   : > { %980 = dma.vmem_to_hbm [thread:$0]  (%p983_p6), %s914_s21, 16, %s1697_s2, [#allocation4]  }
 0x207   : > { %1123 = dma.done.wait (%p983_p6), [#allocation4], 16  }
 0x208   : > { %1125 = vsyncadd (%p983_p6), [#allocation4], 4294967280 }
 0x209 PF: > { %s13_s9 = sadd.s32 1, %s1128_s9  }
 0x20a   : > { %p10_p0 = scmp.ge.s32.totalorder %s13_s9, 5  }
 0x20c   :  { %12 = sbr.rel (!%p10_p0) target bundleno = 1 (0x1), region = 66 }
 0x211   :  { %926 = vsyncpa [#allocation4], 1 }
 0x212   :  { %928 = vsyncpa [#allocation4 + $0x1], 1 }

</bundles_post_ra>
